<compile_context>
chip_gen: v5e
topology: v5e:2x2
jax: 0.10.0
libtpu: 0.0.40
codegen_flags: <defaults>
</compile_context>

<pallas_src>
import math

import jax
import jax.numpy as jnp
from jax.experimental import pallas as pl
from jax.experimental.pallas import tpu as pltpu

F_IN = 16    # SAGEConv input/output width
F_HID = 16
F_OUT = 32   # Linear(3*16, 32) output width

_VMEM_LIMIT = 32 * 1024 * 1024   # n-independent tiles; safe on v5e/v6e/v7x


def _round_up(n, m):
    return (n + m - 1) // m * m


# --------------------------------------------------------------------------
# Kernels
# --------------------------------------------------------------------------
def sage_relu_kernel(a_ref, xk_ref, xrow_ref, wl_ref, wr_ref, bl_ref,
                     o_ref, acc_ref):
    """K-tiled relu(SAGEConv):  acc += A_tile @ x_kslice; epilogue at last k."""
    k = pl.program_id(1)

    @pl.when(k == 0)
    def _():
        acc_ref[...] = jnp.zeros_like(acc_ref)

    # bf16 x bf16 -> f32 accumulate on the MXU.
    acc_ref[...] += jnp.dot(a_ref[...], xk_ref[...],
                            preferred_element_type=jnp.float32)

    @pl.when(k == pl.num_programs(1) - 1)
    def _():
        x_tile = xrow_ref[...].astype(jnp.float32)
        y = (jnp.dot(acc_ref[...], wl_ref[...], preferred_element_type=jnp.float32)
             + jnp.dot(x_tile, wr_ref[...], preferred_element_type=jnp.float32)
             + bl_ref[...])
        o_ref[...] = jnp.maximum(y, 0.0).astype(o_ref.dtype)


def sage_relu_cat_linear_kernel(a_ref, x1k_ref, x1row_ref, x0row_ref,
                                wl_ref, wr_ref, bl_ref,
                                wa_ref, wb_ref, wc_ref, b_ref,
                                o_ref, acc_ref):
    """conv2 + relu fused with Linear over concat([x0,x1,x2]) (K-tiled agg).

    x2_tile  = relu((A@x1)_tile @ WL2t + x1_tile @ WR2t + bl2)
    out_tile = x0_tile @ WAt + x1_tile @ WBt + x2_tile @ WCt + b1
    """
    k = pl.program_id(1)

    @pl.when(k == 0)
    def _():
        acc_ref[...] = jnp.zeros_like(acc_ref)

    acc_ref[...] += jnp.dot(a_ref[...], x1k_ref[...],
                            preferred_element_type=jnp.float32)

    @pl.when(k == pl.num_programs(1) - 1)
    def _():
        x1_tile = x1row_ref[...].astype(jnp.float32)
        x2_tile = jnp.maximum(
            jnp.dot(acc_ref[...], wl_ref[...], preferred_element_type=jnp.float32)
            + jnp.dot(x1_tile, wr_ref[...], preferred_element_type=jnp.float32)
            + bl_ref[...],
            0.0,
        )
        out = (
            jnp.dot(x0row_ref[...].astype(jnp.float32), wa_ref[...],
                    preferred_element_type=jnp.float32)
            + jnp.dot(x1_tile, wb_ref[...], preferred_element_type=jnp.float32)
            + jnp.dot(x2_tile, wc_ref[...], preferred_element_type=jnp.float32)
            + b_ref[...]
        )
        o_ref[...] = out.astype(o_ref.dtype)


# --------------------------------------------------------------------------
# pallas_call wrappers (row x K tiled grid, n-independent VMEM)
# --------------------------------------------------------------------------
def _cparams():
    return pltpu.CompilerParams(
        dimension_semantics=("parallel", "arbitrary"),   # rows split across TCs
        vmem_limit_bytes=_VMEM_LIMIT,
    )


def _sage_relu(a, x, wl_t, wr_t, bl, *, tm, tk):
    n = a.shape[0]
    const = lambda shape: pl.BlockSpec(shape, lambda i, k: (0, 0))
    return pl.pallas_call(
        sage_relu_kernel,
        out_shape=jax.ShapeDtypeStruct((n, F_HID), jnp.bfloat16),
        grid_spec=pltpu.PrefetchScalarGridSpec(
            num_scalar_prefetch=0,
            grid=(n // tm, n // tk),
            in_specs=[
                pl.BlockSpec((tm, tk), lambda i, k: (i, k)),    # A tile (bf16 stream)
                pl.BlockSpec((tk, F_IN), lambda i, k: (k, 0)),  # x K-slice (agg operand)
                pl.BlockSpec((tm, F_IN), lambda i, k: (i, 0)),  # x row tile (lin_r)
                const((F_IN, F_HID)),                           # WL^T
                const((F_IN, F_HID)),                           # WR^T
                const((1, F_HID)),                              # bias
            ],
            out_specs=pl.BlockSpec((tm, F_HID), lambda i, k: (i, 0)),
            scratch_shapes=[pltpu.VMEM((tm, F_HID), jnp.float32)],
        ),
        compiler_params=_cparams(),
    )(a, x, x, wl_t, wr_t, bl)


def _sage_relu_cat_linear(a, x1, x0, wl_t, wr_t, bl, wa_t, wb_t, wc_t, b, *, tm, tk):
    n = a.shape[0]
    const = lambda shape: pl.BlockSpec(shape, lambda i, k: (0, 0))
    return pl.pallas_call(
        sage_relu_cat_linear_kernel,
        out_shape=jax.ShapeDtypeStruct((n, F_OUT), jnp.float32),
        grid_spec=pltpu.PrefetchScalarGridSpec(
            num_scalar_prefetch=0,
            grid=(n // tm, n // tk),
            in_specs=[
                pl.BlockSpec((tm, tk), lambda i, k: (i, k)),      # A tile (bf16 stream)
                pl.BlockSpec((tk, F_HID), lambda i, k: (k, 0)),   # x1 K-slice
                pl.BlockSpec((tm, F_HID), lambda i, k: (i, 0)),   # x1 row tile
                pl.BlockSpec((tm, F_IN), lambda i, k: (i, 0)),    # x0 row tile
                const((F_HID, F_HID)),                            # WL2^T
                const((F_HID, F_HID)),                            # WR2^T
                const((1, F_HID)),                                # bl2
                const((F_IN, F_OUT)),                             # W1[:, 0:16]^T
                const((F_HID, F_OUT)),                            # W1[:, 16:32]^T
                const((F_HID, F_OUT)),                            # W1[:, 32:48]^T
                const((1, F_OUT)),                                # b1
            ],
            out_specs=pl.BlockSpec((tm, F_OUT), lambda i, k: (i, 0)),
            scratch_shapes=[pltpu.VMEM((tm, F_HID), jnp.float32)],
        ),
        compiler_params=_cparams(),
    )(a, x1, x1, x0, wl_t, wr_t, bl, wa_t, wb_t, wc_t, b)


# --------------------------------------------------------------------------
# Graph preprocessing, parameters, forward, reference
# --------------------------------------------------------------------------
def build_mean_adj(edge_index, num_nodes, dtype=jnp.bfloat16):
    """A[dst, src] = 1/in_degree(dst); zero rows for nodes with no in-edges.

    Normalization is done in f32, then cast (bf16 for the kernels).  Building
    directly at the padded size keeps padded rows/cols naturally zero.
    """
    src, dst = edge_index[0], edge_index[1]
    adj = jnp.zeros((num_nodes, num_nodes), jnp.float32).at[dst, src].add(1.0)
    deg = adj.sum(axis=1, keepdims=True)
    a = jnp.where(deg > 0.0, adj / jnp.maximum(deg, 1.0), 0.0)
    return a.astype(dtype)


def init_params(key):
    """Deterministic uniform(-1/sqrt(fan_in), 1/sqrt(fan_in)) init (PyTorch-style)."""
    def uni(k, shape, fan_in):
        b = 1.0 / jnp.sqrt(jnp.float32(fan_in))
        return jax.random.uniform(k, shape, jnp.float32, -b, b)

    ks = jax.random.split(key, 8)
    wl1 = uni(ks[0], (F_HID, F_IN), F_IN)            # conv1.lin_l
    bl1 = uni(ks[1], (F_HID,), F_IN)
    wr1 = uni(ks[2], (F_HID, F_IN), F_IN)            # conv1.lin_r (no bias)
    wl2 = uni(ks[3], (F_HID, F_HID), F_HID)          # conv2.lin_l
    bl2 = uni(ks[4], (F_HID,), F_HID)
    wr2 = uni(ks[5], (F_HID, F_HID), F_HID)          # conv2.lin_r (no bias)
    w1 = uni(ks[6], (F_OUT, 3 * F_HID), 3 * F_HID)   # lin1
    b1 = uni(ks[7], (F_OUT,), 3 * F_HID)
    return (wl1, bl1, wr1), (wl2, bl2, wr2), (w1, b1)


def net4_forward(x0, edge_index, params, *, tm=None, tk=None):
    n = x0.shape[0]
    (wl1, bl1, wr1), (wl2, bl2, wr2), (w1, b1) = params

    # Tile heuristic: power-of-two tiles so tm | tk | n_pad.  (tm,tk)=(512,2048)
    # bf16 A double-buffers at 4 MiB -- fits v7x's 64 MiB as well as v5e/v6e.
    if tk is None:
        tk = min(2048, pl.next_power_of_2(max(n, 128)))
    if tm is None:
        tm = min(512, tk)
    assert tm % 8 == 0 and tk % 128 == 0, "tm must be 8-aligned, tk 128-aligned"
    n_pad = _round_up(n, math.lcm(tm, tk))

    # Adjacency built already padded, normalized in f32, stored bf16.
    a = build_mean_adj(edge_index, n_pad, dtype=jnp.bfloat16)
    x0p = x0 if n_pad == n else jnp.pad(x0, ((0, n_pad - n), (0, 0)))
    x0p = x0p.astype(jnp.bfloat16)

    # Layer 1: x1 = relu(SAGE(x0, A))   (padded rows of x1 = relu(bl1); inert
    # because A's padded columns are zero and out[:n] drops them).
    x1 = _sage_relu(a, x0p, wl1.T, wr1.T, bl1.reshape(1, F_HID), tm=tm, tk=tk)

    # Layer 2 fused with the final Linear (concat folded into three matmuls).
    out = _sage_relu_cat_linear(
        a, x1, x0p,
        wl2.T, wr2.T, bl2.reshape(1, F_HID),
        w1[:, :F_IN].T, w1[:, F_IN:2 * F_IN].T, w1[:, 2 * F_IN:].T,
        b1.reshape(1, F_OUT),
        tm=tm, tk=tk,
    )
    return out[:n]


def net4_reference(x0, edge_index, params):
    a = build_mean_adj(edge_index, x0.shape[0], dtype=jnp.float32)
    (wl1, bl1, wr1), (wl2, bl2, wr2), (w1, b1) = params
    x1 = jnp.maximum((a @ x0) @ wl1.T + bl1 + x0 @ wr1.T, 0.0)
    x2 = jnp.maximum((a @ x1) @ wl2.T + bl2 + x1 @ wr2.T, 0.0)
    return jnp.concatenate([x0, x1, x2], axis=-1) @ w1.T + b1


if __name__ == "__main__":
    N, E = 300, 1200

    key = jax.random.PRNGKey(0)
    kx, ke, kp = jax.random.split(key, 3)

    x0 = jax.random.normal(kx, (N, F_IN), jnp.float32)
    edge_index = jax.random.randint(ke, (2, E), 0, N, dtype=jnp.int32)
    params = init_params(kp)

    ref = jax.block_until_ready(net4_reference(x0, edge_index, params))

    # Small explicit tiles: exercises both the row ("parallel") grid axis and
    # the K ("arbitrary") accumulator path (grid = (6, 3) after padding to 384).
    out = jax.block_until_ready(net4_forward(x0, edge_index, params, tm=64, tk=128))
    assert out.shape == (N, F_OUT)
    # bf16 A / bf16 x operands with f32 accumulation -> relaxed tolerance.
    assert jnp.allclose(out, ref, atol=3e-2, rtol=3e-2), float(jnp.abs(out - ref).max())

    # Default (auto) tiles: single-K-step path.
    out2 = jax.block_until_ready(net4_forward(x0, edge_index, params))
    assert jnp.allclose(out2, ref, atol=3e-2, rtol=3e-2), float(jnp.abs(out2 - ref).max())

    print("KERNEL_OK")
</pallas_src>

<mosaic_0001>
module attributes {stable_mosaic.version = 11 : i64} {
  func.func @sage_relu_kernel(%arg0: i32, %arg1: i32, %arg2: memref<64x128xbf16, #tpu.memory_space<vmem>>, %arg3: memref<128x16xbf16, #tpu.memory_space<vmem>>, %arg4: memref<64x16xbf16, #tpu.memory_space<vmem>>, %arg5: memref<16x16xf32, #tpu.memory_space<vmem>>, %arg6: memref<16x16xf32, #tpu.memory_space<vmem>>, %arg7: memref<1x16xf32, #tpu.memory_space<vmem>>, %arg8: memref<64x16xbf16, #tpu.memory_space<vmem>>, %arg9: memref<64x16xf32, #tpu.memory_space<vmem>>) attributes {dimension_semantics = [#tpu.dimension_semantics<parallel>, #tpu.dimension_semantics<arbitrary>], iteration_bounds = array<i64: 6, 3>, scalar_prefetch = 0 : i64, scratch_operands = 1 : i64, tpu.core_type = #tpu.core_type<tc>, window_params = [{transform_indices = @transform_0, window_bounds = array<i64: 64, 128>}, {transform_indices = @transform_1, window_bounds = array<i64: 128, 16>}, {transform_indices = @transform_2, window_bounds = array<i64: 64, 16>}, {pipeline_mode = #tpu.pipeline_mode<synchronous>, transform_indices = @transform_3, window_bounds = array<i64: 16, 16>}, {pipeline_mode = #tpu.pipeline_mode<synchronous>, transform_indices = @transform_4, window_bounds = array<i64: 16, 16>}, {pipeline_mode = #tpu.pipeline_mode<synchronous>, transform_indices = @transform_5, window_bounds = array<i64: 1, 16>}, {transform_indices = @transform_6, window_bounds = array<i64: 64, 16>}]} {
    %c0_i32 = arith.constant 0 : i32
    %0 = arith.cmpi eq, %arg1, %c0_i32 : i32
    %1 = arith.extui %0 : i1 to i32
    %c0_i32_0 = arith.constant 0 : i32
    %2 = arith.cmpi ne, %1, %c0_i32_0 : i32
    scf.if %2 {
      %cst_9 = arith.constant 0.000000e+00 : f32
      %12 = vector.broadcast %cst_9 : f32 to vector<64x16xf32>
      %c0_10 = arith.constant 0 : index
      %c0_11 = arith.constant 0 : index
      %13 = vector.load %arg9[%c0_10, %c0_11] : memref<64x16xf32, #tpu.memory_space<vmem>>, vector<64x16xf32>
      tpu.vector_store %arg9[%c0_10, %c0_11], %12 {strides = array<i32>} : memref<64x16xf32, #tpu.memory_space<vmem>>, vector<64x16xf32>,
    } else {
    }
    %c0 = arith.constant 0 : index
    %c0_1 = arith.constant 0 : index
    %3 = vector.load %arg9[%c0, %c0_1] : memref<64x16xf32, #tpu.memory_space<vmem>>, vector<64x16xf32>
    %c0_2 = arith.constant 0 : index
    %c0_3 = arith.constant 0 : index
    %4 = vector.load %arg2[%c0_2, %c0_3] : memref<64x128xbf16, #tpu.memory_space<vmem>>, vector<64x128xbf16>
    %c0_4 = arith.constant 0 : index
    %c0_5 = arith.constant 0 : index
    %5 = vector.load %arg3[%c0_4, %c0_5] : memref<128x16xbf16, #tpu.memory_space<vmem>>, vector<128x16xbf16>
    %cst = arith.constant dense<0.000000e+00> : vector<64x16xf32>
    %6 = tpu.matmul %4, %5, %cst {dimension_numbers = #tpu.dot_dimension_numbers<[1], [0], [0], [1], [0, 0, 1, 1], [], []>} : vector<64x128xbf16>, vector<128x16xbf16>, vector<64x16xf32> -> vector<64x16xf32>
    %7 = arith.addf %3, %6 : vector<64x16xf32>
    %c0_6 = arith.constant 0 : index
    %c0_7 = arith.constant 0 : index
    %8 = vector.load %arg9[%c0_6, %c0_7] : memref<64x16xf32, #tpu.memory_space<vmem>>, vector<64x16xf32>
    tpu.vector_store %arg9[%c0_6, %c0_7], %7 {strides = array<i32>} : memref<64x16xf32, #tpu.memory_space<vmem>>, vector<64x16xf32>,
    %c2_i32 = arith.constant 2 : i32
    %9 = arith.cmpi eq, %arg1, %c2_i32 : i32
    %10 = arith.extui %9 : i1 to i32
    %c0_i32_8 = arith.constant 0 : i32
    %11 = arith.cmpi ne, %10, %c0_i32_8 : i32
    scf.if %11 {
      %c0_9 = arith.constant 0 : index
      %c0_10 = arith.constant 0 : index
      %12 = vector.load %arg4[%c0_9, %c0_10] : memref<64x16xbf16, #tpu.memory_space<vmem>>, vector<64x16xbf16>
      %13 = arith.extf %12 : vector<64x16xbf16> to vector<64x16xf32>
      %c0_11 = arith.constant 0 : index
      %c0_12 = arith.constant 0 : index
      %14 = vector.load %arg9[%c0_11, %c0_12] : memref<64x16xf32, #tpu.memory_space<vmem>>, vector<64x16xf32>
      %c0_13 = arith.constant 0 : index
      %c0_14 = arith.constant 0 : index
      %15 = vector.load %arg5[%c0_13, %c0_14] : memref<16x16xf32, #tpu.memory_space<vmem>>, vector<16x16xf32>
      %cst_15 = arith.constant dense<0.000000e+00> : vector<64x16xf32>
      %16 = tpu.matmul %14, %15, %cst_15 {dimension_numbers = #tpu.dot_dimension_numbers<[1], [0], [0], [1], [0, 0, 1, 1], [], []>} : vector<64x16xf32>, vector<16x16xf32>, vector<64x16xf32> -> vector<64x16xf32>
      %c0_16 = arith.constant 0 : index
      %c0_17 = arith.constant 0 : index
      %17 = vector.load %arg6[%c0_16, %c0_17] : memref<16x16xf32, #tpu.memory_space<vmem>>, vector<16x16xf32>
      %cst_18 = arith.constant dense<0.000000e+00> : vector<64x16xf32>
      %18 = tpu.matmul %13, %17, %cst_18 {dimension_numbers = #tpu.dot_dimension_numbers<[1], [0], [0], [1], [0, 0, 1, 1], [], []>} : vector<64x16xf32>, vector<16x16xf32>, vector<64x16xf32> -> vector<64x16xf32>
      %19 = arith.addf %16, %18 : vector<64x16xf32>
      %c0_19 = arith.constant 0 : index
      %c0_20 = arith.constant 0 : index
      %20 = vector.load %arg7[%c0_19, %c0_20] : memref<1x16xf32, #tpu.memory_space<vmem>>, vector<1x16xf32>
      %21 = vector.broadcast %20 : vector<1x16xf32> to vector<64x16xf32>
      %22 = arith.addf %19, %21 : vector<64x16xf32>
      %cst_21 = arith.constant 0.000000e+00 : f32
      %23 = vector.broadcast %cst_21 : f32 to vector<64x16xf32>
      %24 = arith.maximumf %22, %23 : vector<64x16xf32>
      %25 = arith.truncf %24 : vector<64x16xf32> to vector<64x16xbf16>
      %c0_22 = arith.constant 0 : index
      %c0_23 = arith.constant 0 : index
      %26 = vector.load %arg8[%c0_22, %c0_23] : memref<64x16xbf16, #tpu.memory_space<vmem>>, vector<64x16xbf16>
      tpu.vector_store %arg8[%c0_22, %c0_23], %25 {strides = array<i32>} : memref<64x16xbf16, #tpu.memory_space<vmem>>, vector<64x16xbf16>,
    } else {
    }
    return
  }
  func.func @transform_0(%arg0: i32, %arg1: i32) -> (i32, i32) {
    %c0_i32 = arith.constant 0 : i32
    return %arg0, %arg1 : i32, i32
  }
  func.func @transform_1(%arg0: i32, %arg1: i32) -> (i32, i32) {
    %c0_i32 = arith.constant 0 : i32
    %c0_i32_0 = arith.constant 0 : i32
    return %arg1, %c0_i32 : i32, i32
  }
  func.func @transform_2(%arg0: i32, %arg1: i32) -> (i32, i32) {
    %c0_i32 = arith.constant 0 : i32
    %c0_i32_0 = arith.constant 0 : i32
    return %arg0, %c0_i32 : i32, i32
  }
  func.func @transform_3(%arg0: i32, %arg1: i32) -> (i32, i32) {
    %c0_i32 = arith.constant 0 : i32
    %c0_i32_0 = arith.constant 0 : i32
    %c0_i32_1 = arith.constant 0 : i32
    return %c0_i32, %c0_i32_0 : i32, i32
  }
  func.func @transform_4(%arg0: i32, %arg1: i32) -> (i32, i32) {
    %c0_i32 = arith.constant 0 : i32
    %c0_i32_0 = arith.constant 0 : i32
    %c0_i32_1 = arith.constant 0 : i32
    return %c0_i32, %c0_i32_0 : i32, i32
  }
  func.func @transform_5(%arg0: i32, %arg1: i32) -> (i32, i32) {
    %c0_i32 = arith.constant 0 : i32
    %c0_i32_0 = arith.constant 0 : i32
    %c0_i32_1 = arith.constant 0 : i32
    return %c0_i32, %c0_i32_0 : i32, i32
  }
  func.func @transform_6(%arg0: i32, %arg1: i32) -> (i32, i32) {
    %c0_i32 = arith.constant 0 : i32
    %c0_i32_0 = arith.constant 0 : i32
    return %arg0, %c0_i32 : i32, i32
  }
}

</mosaic_0001>

<bundles_post_ra>
// kernel: tpu_custom_call.1
= control target key start
LH: loop header
LB: loop body
LE: loop exit
PB: predicated region body
PF: predicated region fallthrough
CT: control target
= control target key end

     0   :  { %s1360_s0 = inlined_call_operand.hbm [shape: bf16[384,384], index: 0, kind: input, shape index: {}]   ;;  %s1361_s1 = inlined_call_operand.vmem [shape: bf16[384,16], index: 1, kind: input, shape index: {}]   ;;  %s1362_s2 = inlined_call_operand.vmem [shape: bf16[384,16], index: 2, kind: input, shape index: {}]   ;;  %s1363_s3 = inlined_call_operand.vmem [shape: f32[16,16], index: 3, kind: input, shape index: {}]   ;;  %s1364_s4 = inlined_call_operand.vmem [shape: f32[16,16], index: 4, kind: input, shape index: {}]   ;;  %s1365_s5 = inlined_call_operand.vmem [shape: f32[1,16], index: 5, kind: input, shape index: {}]   ;;  %s1366_s6 = inlined_call_operand.vmem [shape: bf16[384,16], index: 6, kind: output, shape index: {}]  }
   0x1   :  { %1369 = sst [smem:[#allocation8_spill]] %s1365_s5 }
   0x2   :  { %11 = vsyncpa [#allocation4], 0 }
   0x3   :  { %13 = vsyncpa [#allocation4 + $0x1], 0  ;;  %s1160_s21 = smov 0   ;;  %s1162_s22 = smov 0  }
   0x4   :  { %s1164_s23 = smov 0   ;;  %s1166_s24 = smov 0  }
   0x5   :  { %s1168_s25 = smov 0   ;;  %s1170_s26 = smov 0  }
   0x6   :  { %s1172_s27 = smov 0   ;;  %s1174_s28 = smov 0  }
   0x7 LB: > { %s803_s29 = sadd.s32 4294967295, %s1119_s28   ;;  %s28_s30 = sadd.s32 1, %s1111_s26  ;;  %s1119_s28 = sphi %s1174_s28, %s19_s28   ;;  %s1115_s27 = sphi %s1172_s27, %s1383_s27   ;;  %s1111_s26 = sphi %s1170_s26, %s1382_s26   ;;  %s1107_s25 = sphi %s1168_s25, %s1381_s25   ;;  %s1103_s24 = sphi %s1166_s24, %s1380_s24   ;;  %s1099_s23 = sphi %s1164_s23, %s1379_s23   ;;  %s1095_s22 = sphi %s1162_s22, %s1378_s22   ;;  %s1091_s21 = sphi %s1160_s21, %s1377_s21  }
   0x8   : > { %p29_p0 = scmp.ge.s32.totalorder %s28_s30, 3  ;;  %s31_s7 = sadd.s32 1, %s1115_s27 }
   0x9   : > { %s40_s8 = sadd.s32 1, %s1099_s23  ;;  %p47_p1 = scmp.ne.s32.totalorder %s1099_s23, %s1095_s22 }
   0xa   : > { %s1385_s30 = smov (%p29_p0, %s28_s30), 0  ;;  %s1387_s7 = smov (!%p29_p0, %s31_s7), %s1115_s27 }
   0xb   : > { %1370 = sst [smem:[#allocation6_spill]] %s1385_s30  ;;  %s36_s9 = ssub.s32 %s1111_s26, %s1385_s30 }
   0xc   : > { %p48_p2 = scmp.eq.s32.totalorder %s1119_s28, 0  ;;  %p33_p3 = scmp.ge.s32.totalorder %s1387_s7, 6 }
   0xd   : > { %p53_p4 = scmp.ne.s32.totalorder %s1095_s22, %s1091_s21  ;;  %p54_p6 = scmp.eq.s32.totalorder %s803_s29, 0 }
   0xe   : > { %p1211_p5 = por %p48_p2, %p47_p1  ;;  %s1389_s7 = smov (%p33_p3, %s1387_s7), 0 }
   0xf   : > { %1372 = sst [smem:[#allocation7_spill]] %s1389_s7  ;;  %p1217_p7 = por %p54_p6, %p53_p4 }
  0x10   : > { %s35_s12 = ssub.s32 %s1115_s27, %s1389_s7  ;;  %p953_p8 = scmp.lt.s32.totalorder %s1119_s28, 18 }
  0x11   : > { %s37_s13 = sor.u32 %s36_s9, %s35_s12  ;;  %s227_s14 = sand.u32 1, %s1099_s23  }
  0x12   : > { %p38_p9 = scmp.eq.s32.totalorder %s37_s13, 0  ;;  %s807_s15 = sshll.u32 %s227_s14, 5 }
  0x13   : > { %s946_s16 = smul.u32 24, %s1115_s27  ;;  %s231_s20 = scalar_lea.vmem [#allocation3], %s807_s15 }
  0x14   : > { %s1227_s17 = scalar_select %p38_p9, %s1099_s23, %s40_s8  }
  0x15   : > { %s236_s18 = sadd.s32 %s1111_s26, %s946_s16  ;;  %s241_s21 = sshll.u32 %s231_s20, 4  ;;  %s242_s21 = int_to_ptr.vmem [resolvable:$true] %s241_s21 }
  0x16   : > { %s810_s19 = sshll.u32 %s236_s18, 2  ;;  %p950_p10 = pnand %p953_p8, %p1211_p5 }
  0x17   : > { %s238_s5 = scalar_lea.hbm %s1360_s0, %s810_s19  ;;  %p811_p11 = scmp.ge.s32.totalorder %s1119_s28, 1 }
  0x18   : > { %s239_s7 = sshll.u32 %s238_s5, 4  ;;  %s228_s9 = scalar_lea.sflag [#allocation4], %s227_s14  ;;  %s240_s7 = int_to_ptr.hbm [resolvable:$true] %s239_s7 }
  0x19   : > { %s1121_s12 = smov 192   ;;  %s1122_s8 = smov 64  }
  0x1a   : > { %s1123_s13 = smov 4   ;;  %p267_p12 = scmp.lt.s32.totalorder %s1119_s28, 19 }
  0x1b   : > { %952 = dma.hbm_to_vmem [thread:$0]  (!%p950_p10), %s240_s7, 512, %s242_s21, %s228_s9, %s1121_s12, %s1122_s8, %s1123_s13  }
  0x1c   : > { %p268_p13 = pnand %p811_p11, %p267_p12 }
  0x1d   : > { %s273_s15 = sand.u32 (!%p268_p13), 1, %s1095_s22  }
  0x1e   : > { %271 = sbr.rel (%p268_p13) target bundleno = 403 (0x193), region = 44  ;;  %s812_s30 = sshll.u32 (!%p268_p13), %s273_s15, 5 }
  0x1f   : > { %s274_s16 = scalar_lea.sflag (!%p268_p13), [#allocation4], %s273_s15  ;;  %s1240_s18 = scalar_lea.vmem (!%p268_p13), [#allocation3], %s812_s30 }
  0x23   : > { %1086 = dma.done.wait (%p1217_p7), %s274_s16, 512  }
  0x24   : > { %1088 = vsyncadd (%p1217_p7), %s274_s16, 4294966784  ;;  %s813_s5 = sshll.u32 %s1103_s24, 4  ;;  %s815_s10 = sshll.u32 %s1107_s25, 3 }
  0x25   : > { %p319_p0 = scmp.lt.s32.totalorder %s813_s5, 47  ;;  %p325_p1 = scmp.lt.s32.totalorder %s815_s10, 47 }
  0x26   : > { %p819_p2 = scmp.ne.s32.totalorder %s1103_s24, 0 }
  0x27   : > { %s1391_s5 = smov (!%p319_p0, %s813_s5), 47  ;;  %s1393_s10 = smov (!%p325_p1, %s815_s10), 47 }
  0x28   : > { %s814_s7 = sshll.u32 %s1391_s5, 2  ;;  %s816_s21 = sshll.u32 %s1393_s10, 2 }
  0x29   : > { %s1251_s20 = scalar_lea.vmem %s1361_s1, %s814_s7  ;;  %s1256_s11 = scalar_lea.vmem %s1362_s2, %s816_s21 }
  0x2a   : > { %s1261_s25 = scalar_lea.vmem %s1366_s6, %s816_s21  ;;  %339 = sbr.rel (%p819_p2) target bundleno = 56 (0x38), region = 52 }
  0x2f   : > { %vm340_vm0 = vcmask 130048   ;;  %v1124_v0 = vmov 0.0  }
  0x30   : > { %341 = vst.msk [vmem:[#allocation2] sm:$0xff] %vm340_vm0, %v1124_v0 }
  0x31   : > { %342 = vst.msk [vmem:[#allocation2 + $0x8] sm:$0xff] %vm340_vm0, %v1124_v0 }
  0x32   : > { %343 = vst.msk [vmem:[#allocation2 + $0x10] sm:$0xff] %vm340_vm0, %v1124_v0 }
  0x33   : > { %344 = vst.msk [vmem:[#allocation2 + $0x18] sm:$0xff] %vm340_vm0, %v1124_v0 }
  0x34   : > { %345 = vst.msk [vmem:[#allocation2 + $0x20] sm:$0xff] %vm340_vm0, %v1124_v0 }
  0x35   : > { %346 = vst.msk [vmem:[#allocation2 + $0x28] sm:$0xff] %vm340_vm0, %v1124_v0 }
  0x36   : > { %347 = vst.msk [vmem:[#allocation2 + $0x30] sm:$0xff] %vm340_vm0, %v1124_v0 }
  0x37   : > { %348 = vst.msk [vmem:[#allocation2 + $0x38] sm:$0xff] %vm340_vm0, %v1124_v0 }
  0x38 PF: > { %v898_v1 = vld [vmem:[%s1251_s20 + $0x38] sm:$0xff]  ;;  %v897_v2 = vld [vmem:[%s1251_s20 + $0x30] sm:$0xff]  ;;  %v896_v3 = vld [vmem:[%s1251_s20 + $0x28] sm:$0xff]  ;;  %vm490_vm1 = vcmask 130048   ;;  %p868_p3 = scmp.ne.s32.totalorder %s1103_s24, 2 }
  0x39   : > { %453 = vmatpush.bf16.msra.mxu0 %v898_v1  ;;  %918 = vmatpush.bf16.msra.mxu1 %v898_v1  ;;  %v895_v4 = vld [vmem:[%s1251_s20 + $0x20] sm:$0xff]  ;;  %v894_v5 = vld [vmem:[%s1251_s20 + $0x18] sm:$0xff]  ;;  %v893_v6 = vld [vmem:[%s1251_s20 + $0x10] sm:$0xff]  ;;  %s1374_s19 = sld [smem:[#allocation8_spill]] (!%p868_p3) }
  0x3a   : > { %919 = vmatpush.bf16.msra.mxu2 %v898_v1  ;;  %920 = vmatpush.bf16.msra.mxu3 %v898_v1  ;;  %v892_v7 = vld [vmem:[%s1251_s20 + $0x8] sm:$0xff]  ;;  %v891_v8 = vld [vmem:[%s1251_s20] sm:$0xff]  ;;  %v889_v11 = vld [vmem:[%s1240_s18 + $0x10] sm:$0xff] }
  0x3b   : > { %v887_v9 = vld [vmem:[%s1240_s18] sm:$0xff]  ;;  %v888_v10 = vld [vmem:[%s1240_s18 + $0x8] sm:$0xff]  ;;  %v890_v12 = vld [vmem:[%s1240_s18 + $0x18] sm:$0xff] }
  0x3c   : > { %v349_v13 = vld [vmem:[#allocation2] sm:$0xff]  ;;  %v351_v14 = vld [vmem:[#allocation2 + $0x10] sm:$0xff]  ;;  %v350_v21 = vld [vmem:[#allocation2 + $0x8] sm:$0xff] }
  0x3d   : > { %454 = vmatpush.bf16.msra.mxu0 %v897_v2  ;;  %921 = vmatpush.bf16.msra.mxu1 %v897_v2  ;;  %v353_v19 = vld [vmem:[#allocation2 + $0x20] sm:$0xff]  ;;  %v355_v20 = vld [vmem:[#allocation2 + $0x30] sm:$0xff]  ;;  %v352_v22 = vld [vmem:[#allocation2 + $0x18] sm:$0xff] }
  0x3e   : > { %922 = vmatpush.bf16.msra.mxu2 %v897_v2  ;;  %923 = vmatpush.bf16.msra.mxu3 %v897_v2  ;;  %v354_v31 = vld [vmem:[#allocation2 + $0x28] sm:$0xff]  ;;  %v356_v32 = vld [vmem:[#allocation2 + $0x38] sm:$0xff] }
  0x41   : > { %455 = vmatpush.bf16.msra.mxu0 %v896_v3  ;;  %924 = vmatpush.bf16.msra.mxu1 %v896_v3 }
  0x42   : > { %925 = vmatpush.bf16.msra.mxu2 %v896_v3  ;;  %926 = vmatpush.bf16.msra.mxu3 %v896_v3 }
  0x45   : > { %456 = vmatpush.bf16.msra.mxu0 %v895_v4  ;;  %927 = vmatpush.bf16.msra.mxu1 %v895_v4 }
  0x46   : > { %928 = vmatpush.bf16.msra.mxu2 %v895_v4  ;;  %929 = vmatpush.bf16.msra.mxu3 %v895_v4 }
  0x49   : > { %457 = vmatpush.bf16.msra.mxu0 %v894_v5  ;;  %930 = vmatpush.bf16.msra.mxu1 %v894_v5 }
  0x4a   : > { %931 = vmatpush.bf16.msra.mxu2 %v894_v5  ;;  %932 = vmatpush.bf16.msra.mxu3 %v894_v5 }
  0x4d   : > { %458 = vmatpush.bf16.msra.mxu0 %v893_v6  ;;  %933 = vmatpush.bf16.msra.mxu1 %v893_v6 }
  0x4e   : > { %934 = vmatpush.bf16.msra.mxu2 %v893_v6  ;;  %935 = vmatpush.bf16.msra.mxu3 %v893_v6 }
  0x51   : > { %459 = vmatpush.bf16.msra.mxu0 %v892_v7  ;;  %936 = vmatpush.bf16.msra.mxu1 %v892_v7 }
  0x52   : > { %937 = vmatpush.bf16.msra.mxu2 %v892_v7  ;;  %938 = vmatpush.bf16.msra.mxu3 %v892_v7 }
  0x55   : > { %460 = vmatpush.bf16.msra.mxu0 %v891_v8  ;;  %939 = vmatpush.bf16.msra.mxu1 %v891_v8 }
  0x56   : > { %940 = vmatpush.bf16.msra.mxu2 %v891_v8  ;;  %941 = vmatpush.bf16.msra.mxu3 %v891_v8 }
  0x58   : > { %461 = vmatmul.bf16.vlgmr.msra.gmra.mxu0 %v887_v9  ;;  %466 = vmatmul.bf16.vlgmr.msra.gmra.mxu1 %v888_v10 }
  0x59   : > { %471 = vmatmul.bf16.vlgmr.msra.gmra.mxu2 %v889_v11  ;;  %476 = vmatmul.bf16.vlgmr.msra.gmra.mxu3 %v890_v12 }
  0xd5   : > { %v462_v15 = vpop.f32.mrf.mxu0  ;;  %v467_v16 = vpop.f32.mrf.mxu1 }
  0xd6   : > { %v482_v17 = vadd.f32 %v462_v15, %v349_v13  ;;  %v484_v18 = vadd.f32 %v467_v16, %v351_v14 }
  0xd8   : > { %491 = vst.msk [vmem:[#allocation2] sm:$0xff] %vm490_vm1, %v482_v17 }
  0xd9   : > { %493 = vst.msk [vmem:[#allocation2 + $0x10] sm:$0xff] %vm490_vm1, %v484_v18 }
  0xdc   : > { %v472_v23 = vpop.f32.mrf.mxu2  ;;  %v477_v24 = vpop.f32.mrf.mxu3 }
  0xdd   : > { %v486_v25 = vadd.f32 %v472_v23, %v353_v19  ;;  %v488_v26 = vadd.f32 %v477_v24, %v355_v20  ;;  %v464_v27 = vpop.f32.mrf.mxu0  ;;  %v469_v28 = vpop.f32.mrf.mxu1 }
  0xde   : > { %v483_v29 = vadd.f32 %v464_v27, %v350_v21  ;;  %v485_v30 = vadd.f32 %v469_v28, %v352_v22 }
  0xdf   : > { %495 = vst.msk [vmem:[#allocation2 + $0x20] sm:$0xff] %vm490_vm1, %v486_v25 }
  0xe0   : > { %497 = vst.msk [vmem:[#allocation2 + $0x30] sm:$0xff] %vm490_vm1, %v488_v26 }
  0xe1   : > { %492 = vst.msk [vmem:[#allocation2 + $0x8] sm:$0xff] %vm490_vm1, %v483_v29 }
  0xe2   : > { %494 = vst.msk [vmem:[#allocation2 + $0x18] sm:$0xff] %vm490_vm1, %v485_v30 }
  0xe4   : > { %v474_v33 = vpop.f32.mrf.mxu2  ;;  %v479_v34 = vpop.f32.mrf.mxu3  ;;  %502 = sbr.rel (%p868_p3) target bundleno = 403 (0x193), region = 56 }
  0xe5   : > { %v487_v35 = vadd.f32 %v474_v33, %v354_v31  ;;  %v489_v36 = vadd.f32 %v479_v34, %v356_v32 }
  0xe7   : > { %496 = vst.msk [vmem:[#allocation2 + $0x28] sm:$0xff] %vm490_vm1, %v487_v35 }
  0xe8   : > { %498 = vst.msk [vmem:[#allocation2 + $0x38] sm:$0xff] %vm490_vm1, %v489_v36 }
  0xe9   : > { %v530_v37 = vld [vmem:[%s1364_s4 + $0x8] sm:$0xff]  ;;  %v529_v39 = vld [vmem:[%s1364_s4] sm:$0xff]  ;;  %v916_v41 = vld [vmem:[%s1256_s11 + $0x10] sm:$0xff]   ;;  %vm689_vm2 = vcmask 125952  }
  0xea   : > { %v528_v38 = vld [vmem:[%s1363_s3 + $0x8] sm:$0xff]  ;;  %942 = vmatpush.msra.mxu2 %v530_v37  ;;  %v527_v40 = vld [vmem:[%s1363_s3] sm:$0xff]  ;;  %v909_v43 = vunpack.c.l.bf16 %v916_v41  ;;  %569 = vmatpush.msra.mxu0 %v530_v37  ;;  %v910_v47 = vunpack.c.h.bf16 %v916_v41  ;;  %v917_v51 = vld [vmem:[%s1256_s11 + $0x18] sm:$0xff]  }
  0xeb   : > { %944 = vmatpush.msra.mxu3 %v528_v38  ;;  %v523_v42 = vld [vmem:[#allocation2 + $0x20] sm:$0xff]  ;;  %634 = vmatpush.msra.mxu1 %v528_v38  ;;  %v520_v50 = vld [vmem:[#allocation2 + $0x8] sm:$0xff]  ;;  %v913_v53 = vunpack.c.l.bf16 %v917_v51  ;;  %v525_v54 = vld [vmem:[#allocation2 + $0x30] sm:$0xff]  ;;  %v914_v57 = vunpack.c.h.bf16 %v917_v51 }
  0xec   : > { %v900_v44 = vld [vmem:[%s1256_s11] sm:$0xff]   ;;  %943 = vmatpush.msra.mxu2 %v529_v39  ;;  %570 = vmatpush.msra.mxu0 %v529_v39  ;;  %v915_v52 = vld [vmem:[%s1256_s11 + $0x8] sm:$0xff]   ;;  %v521_v56 = vld [vmem:[#allocation2 + $0x10] sm:$0xff] }
  0xed   : > { %945 = vmatpush.msra.mxu3 %v527_v40  ;;  %v901_v45 = vunpack.c.l.bf16 %v900_v44  ;;  %v519_v46 = vld [vmem:[#allocation2] sm:$0xff]  ;;  %873 = vmatmul.msk.f32.vlgmr.msra.gmra.mxu2 %vm490_vm1, %v909_v43  ;;  %v902_v49 = vunpack.c.h.bf16 %v900_v44  ;;  %v905_v55 = vunpack.c.l.bf16 %v915_v52  ;;  %v906_v59 = vunpack.c.h.bf16 %v915_v52  ;;  %v522_v60 = vld [vmem:[#allocation2 + $0x18] sm:$0xff] }
  0xee   : > { %881 = vmatmul.msk.f32.vlgmr.msra.gmra.mxu3 %vm490_vm1, %v523_v42  ;;  %635 = vmatpush.msra.mxu1 %v527_v40  ;;  %v524_v48 = vld [vmem:[#allocation2 + $0x28] sm:$0xff]  ;;  %v1022_v61 = vld [vmem:[%s1374_s19] ss:$0 sm:$0xff] }
  0xef   : > { %869 = vmatmul.msk.f32.vlgmr.msra.gmra.mxu0 %vm490_vm1, %v901_v45  ;;  %877 = vmatmul.msk.f32.vlgmr.msra.gmra.mxu1 %vm490_vm1, %v519_v46  ;;  %v526_v58 = vld [vmem:[#allocation2 + $0x38] sm:$0xff] }
  0xf5   : > { %874 = vmatmul.msk.f32.gmra.mxu2 %vm490_vm1, %v910_v47 }
  0xf6   : > { %882 = vmatmul.msk.f32.gmra.mxu3 %vm490_vm1, %v524_v48 }
  0xf7   : > { %870 = vmatmul.msk.f32.gmra.mxu0 %vm490_vm1, %v902_v49  ;;  %878 = vmatmul.msk.f32.gmra.mxu1 %vm490_vm1, %v520_v50 }
  0xfd   : > { %875 = vmatmul.msk.f32.gmra.mxu2 %vm490_vm1, %v913_v53 }
  0xfe   : > { %883 = vmatmul.msk.f32.gmra.mxu3 %vm490_vm1, %v525_v54 }
  0xff   : > { %871 = vmatmul.msk.f32.gmra.mxu0 %vm490_vm1, %v905_v55  ;;  %879 = vmatmul.msk.f32.gmra.mxu1 %vm490_vm1, %v521_v56 }
 0x105   : > { %876 = vmatmul.msk.f32.gmra.mxu2 %vm490_vm1, %v914_v57 }
 0x106   : > { %884 = vmatmul.msk.f32.gmra.mxu3 %vm490_vm1, %v526_v58 }
 0x107   : > { %872 = vmatmul.msk.f32.gmra.mxu0 %vm490_vm1, %v906_v59  ;;  %880 = vmatmul.msk.f32.gmra.mxu1 %vm490_vm1, %v522_v60 }
 0x16c   : > { %v572_v62 = vpop.f32.mrf.mxu0  ;;  %v637_v63 = vpop.f32.mrf.mxu1 }
 0x16d   : > { %v638_v0 = vadd.f32 %v637_v63, %v572_v62 }
 0x16f   : > { %v665_v1 = vadd.f32 %v1022_v61, %v638_v0 }
 0x170   : > { %v584_v2 = vpop.f32.mrf.mxu2 }
 0x171   : > { %v649_v3 = vpop.f32.mrf.mxu3  ;;  %v673_v4 = vmax.f32 %v665_v1, 0.0 }
 0x172   : > { %v650_v5 = vadd.f32 %v649_v3, %v584_v2 }
 0x173   : > { %v681_v6 = vpack.c.bf16 %v673_v4, %v673_v4 }
 0x174   : > { %v669_v7 = vadd.f32 %v1022_v61, %v650_v5  ;;  %v575_v8 = vpop.f32.mrf.mxu0  ;;  %v640_v9 = vpop.f32.mrf.mxu1 }
 0x175   : > { %690 = vst.msk [vmem:[%s1261_s25] sm:$0xf] %vm689_vm2, %v681_v6  ;;  %v641_v11 = vadd.f32 %v640_v9, %v575_v8 }
 0x176   : > { %v677_v10 = vmax.f32 %v669_v7, 0.0 }
 0x177   : > { %v666_v13 = vadd.f32 %v1022_v61, %v641_v11 }
 0x178   : > { %v685_v12 = vpack.c.bf16 %v677_v10, %v677_v10  ;;  %v587_v14 = vpop.f32.mrf.mxu2 }
 0x179   : > { %v652_v15 = vpop.f32.mrf.mxu3  ;;  %v674_v16 = vmax.f32 %v666_v13, 0.0 }
 0x17a   : > { %694 = vst.msk [vmem:[%s1261_s25 + $0x10] sm:$0xf] %vm689_vm2, %v685_v12  ;;  %v653_v17 = vadd.f32 %v652_v15, %v587_v14 }
 0x17b   : > { %v682_v18 = vpack.c.bf16 %v674_v16, %v674_v16 }
 0x17c   : > { %v670_v19 = vadd.f32 %v1022_v61, %v653_v17  ;;  %v578_v20 = vpop.f32.mrf.mxu0  ;;  %v643_v21 = vpop.f32.mrf.mxu1 }
 0x17d   : > { %691 = vst.msk [vmem:[%s1261_s25 + $0x4] sm:$0xf] %vm689_vm2, %v682_v18  ;;  %v644_v23 = vadd.f32 %v643_v21, %v578_v20 }
 0x17e   : > { %v678_v22 = vmax.f32 %v670_v19, 0.0 }
 0x17f   : > { %v667_v25 = vadd.f32 %v1022_v61, %v644_v23 }
 0x180   : > { %v686_v24 = vpack.c.bf16 %v678_v22, %v678_v22  ;;  %v590_v26 = vpop.f32.mrf.mxu2 }
 0x181   : > { %v655_v27 = vpop.f32.mrf.mxu3  ;;  %v675_v28 = vmax.f32 %v667_v25, 0.0 }
 0x182   : > { %695 = vst.msk [vmem:[%s1261_s25 + $0x14] sm:$0xf] %vm689_vm2, %v686_v24  ;;  %v656_v29 = vadd.f32 %v655_v27, %v590_v26 }
 0x183   : > { %v683_v30 = vpack.c.bf16 %v675_v28, %v675_v28 }
 0x184   : > { %v671_v31 = vadd.f32 %v1022_v61, %v656_v29  ;;  %v581_v32 = vpop.f32.mrf.mxu0  ;;  %v646_v33 = vpop.f32.mrf.mxu1 }
 0x185   : > { %692 = vst.msk [vmem:[%s1261_s25 + $0x8] sm:$0xf] %vm689_vm2, %v683_v30  ;;  %v647_v35 = vadd.f32 %v646_v33, %v581_v32 }
 0x186   : > { %v679_v34 = vmax.f32 %v671_v31, 0.0 }
 0x187   : > { %v668_v37 = vadd.f32 %v1022_v61, %v647_v35 }
 0x188   : > { %v687_v36 = vpack.c.bf16 %v679_v34, %v679_v34  ;;  %v593_v38 = vpop.f32.mrf.mxu2 }
 0x189   : > { %v658_v39 = vpop.f32.mrf.mxu3  ;;  %v676_v40 = vmax.f32 %v668_v37, 0.0 }
 0x18a   : > { %696 = vst.msk [vmem:[%s1261_s25 + $0x18] sm:$0xf] %vm689_vm2, %v687_v36  ;;  %v659_v41 = vadd.f32 %v658_v39, %v593_v38 }
 0x18b   : > { %v684_v42 = vpack.c.bf16 %v676_v40, %v676_v40 }
 0x18c   : > { %v672_v43 = vadd.f32 %v1022_v61, %v659_v41 }
 0x18d   : > { %693 = vst.msk [vmem:[%s1261_s25 + $0xc] sm:$0xf] %vm689_vm2, %v684_v42 }
 0x18e   : > { %v680_v44 = vmax.f32 %v672_v43, 0.0 }
 0x190   : > { %v688_v45 = vpack.c.bf16 %v680_v44, %v680_v44 }
 0x192   : > { %697 = vst.msk [vmem:[%s1261_s25 + $0x1c] sm:$0xf] %vm689_vm2, %v688_v45 }
 0x193 PF: > { %s19_s28 = sadd.s32 1, %s1119_s28   ;;  %s1375_s20 = sld [smem:[#allocation6_spill]] }
 0x194   : > { %p16_p4 = scmp.ge.s32.totalorder %s19_s28, 20   ;;  %s1376_s29 = sld [smem:[#allocation7_spill]] }
 0x195   : > { %s1377_s21 = smov %s1095_s22  ;;  %s1378_s22 = smov %s1099_s23 }
 0x196   : > { %s1379_s23 = smov %s1227_s17  ;;  %s1380_s24 = smov %s1111_s26 }
 0x197   : > { %s1381_s25 = smov %s1115_s27  ;;  %18 = sbr.rel (!%p16_p4) target bundleno = 7 (0x7), region = 98 }
 0x199   : > { %s1382_s26 = smov %s1375_s20 }
 0x19a   : > { %s1383_s27 = smov %s1376_s29 }
 0x19c   :  { %720 = vsyncpa [#allocation4], 1 }
 0x19d   :  { %722 = vsyncpa [#allocation4 + $0x1], 1 }

</bundles_post_ra>
